<compile_context>
chip_gen: v7x
topology: tpu7x:2x2x1
jax: 0.10.0
libtpu: 0.0.40
codegen_flags: <defaults>
</compile_context>

<pallas_src>
import jax
import jax.numpy as jnp
from jax.experimental import pallas as pl
from jax.experimental.pallas import tpu as pltpu


def _round_up(x, m):
    return ((x + m - 1) // m) * m


def _default_block_rows():
    # 128 is native for v5e/v5p's 128x128 MXU; v6e/v7x have 256-wide MXUs and
    # benefit from 256-row tiles (fewer grid steps, larger adjacency DMAs).
    try:
        kind = jax.devices()[0].device_kind.lower()
        if "v5" in kind or "v4" in kind:
            return 128
    except Exception:
        pass
    return 256


# ----------------------------- Pallas kernel --------------------------------
def _make_fused_gcn_kernel(n_valid):
    """Builds the fused kernel, closing over the true node count so padded
    rows of the hidden activation can be masked explicitly (robust even if
    padded adjacency columns ever become non-zero)."""

    def kernel(adj_ref, x_ref, w1_ref, b1_ref, w2_ref, b2_ref,
               out_ref, t1_ref, t2_ref, h_ref):
        layer = pl.program_id(0)
        i = pl.program_id(1)
        tm = adj_ref.shape[0]

        # ---- per-layer one-shot feature transform, kept resident in VMEM ----
        # Layer 0: T1 = X @ W1.   Layer 1: T2 = H @ W2 (H is complete by now,
        # the layer axis is the outer/slow grid axis).
        @pl.when((layer == 0) & (i == 0))
        def _():
            xw = jnp.dot(x_ref[...], w1_ref[...],
                         preferred_element_type=jnp.float32)
            t1_ref[...] = xw.astype(t1_ref.dtype)

        @pl.when((layer == 1) & (i == 0))
        def _():
            hw = jnp.dot(h_ref[...], w2_ref[...],
                         preferred_element_type=jnp.float32)
            t2_ref[...] = hw.astype(t2_ref.dtype)

        # ---- neighborhood aggregation for this node-row tile -----------------
        # (TM, N_pad) @ (N_pad, F): bf16 operands, f32 accumulation on the MXU.
        @pl.when(layer == 0)
        def _():
            agg = jnp.dot(adj_ref[...], t1_ref[...],
                          preferred_element_type=jnp.float32)
            h = jnp.maximum(agg + b1_ref[...], 0.0)          # f32 epilogue
            # Explicitly zero padded node rows so layer 2 never sees relu(b1)
            # garbage in the padding (previously relied on zero adj columns).
            rows = jax.lax.broadcasted_iota(jnp.int32, (tm, 1), 0) + i * tm
            h = jnp.where(rows < n_valid, h, 0.0)
            row0 = pl.multiple_of(i * tm, tm)
            h_ref[pl.ds(row0, tm), :] = h.astype(h_ref.dtype)
            # NOTE: no out_ref write here -- the out index map pins layer 0 to
            # output block 0, so there is no duplicate HBM writeback.

        @pl.when(layer == 1)
        def _():
            agg = jnp.dot(adj_ref[...], t2_ref[...],
                          preferred_element_type=jnp.float32)
            out_ref[...] = (agg + b2_ref[...]).astype(out_ref.dtype)

    return kernel


def fused_gcn_encoder(adj, x, w1, b1, w2, b2, *,
                      compute_dtype=jnp.bfloat16,
                      out_dtype=jnp.float32,
                      block_rows=None):
    """relu(A_hat @ X @ W1 + b1) -> A_hat @ (.) @ W2 + b2, one pallas_call."""
    n, f_in = x.shape
    hidden = w1.shape[1]
    f_out = w2.shape[1]

    if block_rows is None:
        block_rows = _default_block_rows()

    # Per-dimension lane-dense padding (not a single uniform max width): keeps
    # each matmul's K/N and the n_pad-tall VMEM scratches as small as possible.
    f_in_pad = _round_up(f_in, 128)
    hid_pad = _round_up(hidden, 128)
    f_out_pad = _round_up(f_out, 128)

    sub = 16 if compute_dtype == jnp.bfloat16 else 8
    tm = _round_up(min(block_rows, _round_up(n, 128)), sub)
    n_pad = _round_up(n, tm)
    n_tiles = n_pad // tm

    cdt = compute_dtype
    # The aggregation is HBM-bound on the adjacency stream; bf16 already halves
    # it vs f32.
    # TODO(synk): quantize adjacency to fp8 (v7x MXU) / int8 + per-row scale
    # (v5e/v6e MXU) to halve the dominant HBM stream again, and replace the
    # dense A_hat with a CSR scalar-prefetch gather kernel for large sparse
    # graphs (dense A_hat is O(N^2) HBM).
    adj_p = jnp.zeros((n_pad, n_pad), cdt).at[:n, :n].set(adj.astype(cdt))
    x_p = jnp.zeros((n_pad, f_in_pad), cdt).at[:n, :f_in].set(x.astype(cdt))
    w1_p = jnp.zeros((f_in_pad, hid_pad), cdt).at[:f_in, :hidden].set(w1.astype(cdt))
    w2_p = jnp.zeros((hid_pad, f_out_pad), cdt).at[:hidden, :f_out].set(w2.astype(cdt))
    b1_p = jnp.zeros((1, hid_pad), jnp.float32).at[0, :hidden].set(b1)
    b2_p = jnp.zeros((1, f_out_pad), jnp.float32).at[0, :f_out].set(b2)

    isz = jnp.dtype(cdt).itemsize
    osz = jnp.dtype(out_dtype).itemsize

    # VMEM footprint estimate (BlockSpec double-buffers pipelined operands);
    # raise the scoped limit explicitly (v5e default is only 16 MiB).
    vmem_est = (2 * tm * n_pad * isz              # adj row tile (double buffer)
                + 2 * n_pad * f_in_pad * isz      # x
                + 2 * f_in_pad * hid_pad * isz    # w1
                + 2 * hid_pad * f_out_pad * isz   # w2
                + 2 * (hid_pad + f_out_pad) * 4   # biases
                + 2 * tm * f_out_pad * osz        # out tile
                + 2 * n_pad * hid_pad * isz       # t1 + h scratch
                + n_pad * f_out_pad * isz)        # t2 scratch
    vmem_limit = int(min(max(2 * vmem_est, 32 * 1024 * 1024),
                         96 * 1024 * 1024))       # stay under v7x's 64 MiB when small

    cost = pl.CostEstimate(
        flops=(2 * n_pad * f_in_pad * hid_pad       # X @ W1
               + 2 * n_pad * n_pad * hid_pad        # A_hat @ (XW1)
               + 2 * n_pad * hid_pad * f_out_pad    # H @ W2
               + 2 * n_pad * n_pad * f_out_pad),    # A_hat @ (HW2)
        transcendentals=0,
        bytes_accessed=(2 * n_pad * n_pad * isz     # adj streamed once per layer
                        + n_pad * f_in_pad * isz
                        + f_in_pad * hid_pad * isz
                        + hid_pad * f_out_pad * isz
                        + (hid_pad + f_out_pad) * 4
                        + n_pad * f_out_pad * osz), # output written once
    )

    kernel = _make_fused_gcn_kernel(n)

    out_p = pl.pallas_call(
        kernel,
        out_shape=jax.ShapeDtypeStruct((n_pad, f_out_pad), out_dtype),
        grid_spec=pltpu.PrefetchScalarGridSpec(
            num_scalar_prefetch=0,
            grid=(2, n_tiles),                               # (layer, row tile)
            in_specs=[
                pl.BlockSpec((tm, n_pad), lambda l, i: (i, 0)),           # adj tile
                # TODO(synk): pipeline_mode=pl.Buffered(1) on the constant-index
                # operands below would reclaim their second VMEM buffer (most
                # valuable on v7x's 64 MiB); also K-tile the n_pad contraction /
                # stream X per row tile for very large N.
                pl.BlockSpec((n_pad, f_in_pad), lambda l, i: (0, 0)),     # x
                pl.BlockSpec((f_in_pad, hid_pad), lambda l, i: (0, 0)),   # w1
                pl.BlockSpec((1, hid_pad), lambda l, i: (0, 0)),          # b1
                pl.BlockSpec((hid_pad, f_out_pad), lambda l, i: (0, 0)),  # w2
                pl.BlockSpec((1, f_out_pad), lambda l, i: (0, 0)),        # b2
            ],
            # Layer 0 is pinned to output block 0 (i*l == 0), so no output block
            # is ever written back twice; layer 1 walks each block exactly once
            # with real data.
            out_specs=pl.BlockSpec((tm, f_out_pad), lambda l, i: (i * l, 0)),
            scratch_shapes=[
                pltpu.VMEM((n_pad, hid_pad), cdt),     # t1 = X @ W1
                pltpu.VMEM((n_pad, f_out_pad), cdt),   # t2 = H @ W2
                pltpu.VMEM((n_pad, hid_pad), cdt),     # h  = relu(A_hat@XW1 + b1)
            ],
        ),
        # The inter-layer barrier (layer 2 needs every node's H) serializes the
        # grid, so both axes are "arbitrary".  For very large N (or once the
        # adjacency stream is shrunk), split into one call per layer with a
        # "parallel" row axis for megacore/v7x.
        compiler_params=pltpu.CompilerParams(
            dimension_semantics=("arbitrary", "arbitrary"),
            vmem_limit_bytes=vmem_limit,
        ),
        cost_estimate=cost,
    )(adj_p, x_p, w1_p, b1_p, w2_p, b2_p)
    return out_p[:n, :f_out]


# ------------------------------- glue (JAX) ----------------------------------
def normalized_adjacency(edge_index, num_nodes):
    """Dense D^{-1/2}(A + I)D^{-1/2} matching PyG gcn_norm: duplicate edges
    accumulate weight; self-loops are added only where missing."""
    src, dst = edge_index[0], edge_index[1]
    a = jnp.zeros((num_nodes, num_nodes), jnp.float32).at[dst, src].add(1.0)
    diag = jnp.diagonal(a)
    a = a + jnp.diag(jnp.where(diag == 0.0, 1.0, 0.0))
    deg = jnp.sum(a, axis=1)
    d_inv_sqrt = jnp.where(deg > 0, 1.0 / jnp.sqrt(deg), 0.0)
    return d_inv_sqrt[:, None] * a * d_inv_sqrt[None, :]


class Encoder:
    """JAX/Pallas port of the PyTorch Encoder (two GCNConv layers, fused)."""

    def __init__(self, in_channels, out_channels, key):
        hidden = 2 * out_channels
        k1, k2 = jax.random.split(key)
        self.w1 = jax.random.normal(k1, (in_channels, hidden), jnp.float32) * (
            1.0 / jnp.sqrt(jnp.float32(in_channels)))
        self.b1 = jnp.zeros((hidden,), jnp.float32)
        self.w2 = jax.random.normal(k2, (hidden, out_channels), jnp.float32) * (
            1.0 / jnp.sqrt(jnp.float32(hidden)))
        self.b2 = jnp.zeros((out_channels,), jnp.float32)

    def __call__(self, x, edge_index, *, compute_dtype=jnp.bfloat16):
        n = x.shape[0]
        # TODO(synk): cache A_hat per graph / CSR scalar-prefetch gather kernel
        # for large sparse graphs.
        adj = normalized_adjacency(edge_index, n)
        return fused_gcn_encoder(adj, x, self.w1, self.b1, self.w2, self.b2,
                                 compute_dtype=compute_dtype)


# ------------------------------ reference checks ------------------------------
def encoder_ref_f32(enc, x, edge_index):
    hp = jax.lax.Precision.HIGHEST
    adj = normalized_adjacency(edge_index, x.shape[0])
    h = jnp.maximum(
        jnp.dot(adj, jnp.dot(x, enc.w1, precision=hp), precision=hp) + enc.b1, 0.0)
    return jnp.dot(adj, jnp.dot(h, enc.w2, precision=hp), precision=hp) + enc.b2


def encoder_ref_cast(enc, x, edge_index, dtype):
    """Mirrors the kernel math exactly (same casts, f32 accumulation)."""
    adj = normalized_adjacency(edge_index, x.shape[0]).astype(dtype)
    xw = jnp.dot(x.astype(dtype), enc.w1.astype(dtype),
                 preferred_element_type=jnp.float32).astype(dtype)
    h = jnp.maximum(jnp.dot(adj, xw, preferred_element_type=jnp.float32)
                    + enc.b1, 0.0).astype(dtype)
    hw = jnp.dot(h, enc.w2.astype(dtype),
                 preferred_element_type=jnp.float32).astype(dtype)
    return jnp.dot(adj, hw, preferred_element_type=jnp.float32) + enc.b2


if __name__ == "__main__":
    key = jax.random.PRNGKey(0)
    k_x, k_p = jax.random.split(key)

    num_nodes = 8
    in_channels = 4
    out_channels = 8   # hidden = 16

    x = jax.random.normal(k_x, (num_nodes, in_channels), jnp.float32)
    # Bidirectional ring graph over 8 nodes: edge_index shape (2, 16).
    fwd = jnp.stack([jnp.arange(num_nodes), (jnp.arange(num_nodes) + 1) % num_nodes])
    edge_index = jnp.concatenate([fwd, fwd[::-1]], axis=1).astype(jnp.int32)

    enc = Encoder(in_channels, out_channels, k_p)
    encode = jax.jit(enc)                       # caches adjacency build + kernel
    z = jax.block_until_ready(encode(x, edge_index))

    assert z.shape == (num_nodes, out_channels)

    # Tight check: same math (bf16 operands, f32 accumulation) done in plain JAX.
    z_cast = encoder_ref_cast(enc, x, edge_index, jnp.bfloat16)
    assert jnp.allclose(z, z_cast, atol=1e-3, rtol=1e-3), "kernel != cast reference"

    # Loose sanity check against the full-precision f32 reference
    # (difference is dominated by the intended bf16 rounding of operands).
    z_ref = encoder_ref_f32(enc, x, edge_index)
    assert jnp.allclose(z, z_ref, atol=1e-1, rtol=1e-1), "kernel far from f32 reference"

    print("KERNEL_OK")
</pallas_src>

<mosaic_0001>
module attributes {stable_mosaic.version = 11 : i64} {
  func.func private @main(%arg0: i32) attributes {dimension_semantics = [#tpu.dimension_semantics<core_parallel>], iteration_bounds = array<i64: 2>, tpu.core_type = #tpu.core_type<sc_scalar_subcore>, window_params = []} {
    return
  }
}

module attributes {stable_mosaic.version = 11 : i64} {
  func.func private @main(%arg0: i32) attributes {dimension_semantics = [#tpu.dimension_semantics<core_parallel>], iteration_bounds = array<i64: 2>, tpu.core_type = #tpu.core_type<sc_scalar_subcore>, window_params = []} {
    return
  }
}

module attributes {stable_mosaic.version = 11 : i64} {
  func.func @kernel(%arg0: i32, %arg1: i32, %arg2: memref<128x128xbf16, #tpu.memory_space<vmem>>, %arg3: memref<128x128xbf16, #tpu.memory_space<vmem>>, %arg4: memref<128x128xbf16, #tpu.memory_space<vmem>>, %arg5: memref<1x128xf32, #tpu.memory_space<vmem>>, %arg6: memref<128x128xbf16, #tpu.memory_space<vmem>>, %arg7: memref<1x128xf32, #tpu.memory_space<vmem>>, %arg8: memref<128x128xf32, #tpu.memory_space<vmem>>, %arg9: memref<128x128xbf16, #tpu.memory_space<vmem>>, %arg10: memref<128x128xbf16, #tpu.memory_space<vmem>>, %arg11: memref<128x128xbf16, #tpu.memory_space<vmem>>) attributes {dimension_semantics = [#tpu.dimension_semantics<arbitrary>, #tpu.dimension_semantics<arbitrary>], iteration_bounds = array<i64: 2, 1>, scalar_prefetch = 0 : i64, scratch_operands = 3 : i64, tpu.core_type = #tpu.core_type<tc>, window_params = [{transform_indices = @transform_0, window_bounds = array<i64: 128, 128>}, {pipeline_mode = #tpu.pipeline_mode<synchronous>, transform_indices = @transform_1, window_bounds = array<i64: 128, 128>}, {pipeline_mode = #tpu.pipeline_mode<synchronous>, transform_indices = @transform_2, window_bounds = array<i64: 128, 128>}, {pipeline_mode = #tpu.pipeline_mode<synchronous>, transform_indices = @transform_3, window_bounds = array<i64: 1, 128>}, {pipeline_mode = #tpu.pipeline_mode<synchronous>, transform_indices = @transform_4, window_bounds = array<i64: 128, 128>}, {pipeline_mode = #tpu.pipeline_mode<synchronous>, transform_indices = @transform_5, window_bounds = array<i64: 1, 128>}, {transform_indices = @transform_6, window_bounds = array<i64: 128, 128>}]} {
    %c0_i32 = arith.constant 0 : i32
    %0 = arith.cmpi eq, %arg0, %c0_i32 : i32
    %c0_i32_0 = arith.constant 0 : i32
    %1 = arith.cmpi eq, %arg1, %c0_i32_0 : i32
    %2 = arith.andi %0, %1 : i1
    %3 = arith.extui %2 : i1 to i32
    %c0_i32_1 = arith.constant 0 : i32
    %4 = arith.cmpi ne, %3, %c0_i32_1 : i32
    scf.if %4 {
      %c0 = arith.constant 0 : index
      %c0_8 = arith.constant 0 : index
      %16 = vector.load %arg3[%c0, %c0_8] : memref<128x128xbf16, #tpu.memory_space<vmem>>, vector<128x128xbf16>
      %c0_9 = arith.constant 0 : index
      %c0_10 = arith.constant 0 : index
      %17 = vector.load %arg4[%c0_9, %c0_10] : memref<128x128xbf16, #tpu.memory_space<vmem>>, vector<128x128xbf16>
      %cst = arith.constant dense<0.000000e+00> : vector<128x128xf32>
      %18 = tpu.matmul %16, %17, %cst {dimension_numbers = #tpu.dot_dimension_numbers<[1], [0], [0], [1], [0, 0, 1, 1], [], []>} : vector<128x128xbf16>, vector<128x128xbf16>, vector<128x128xf32> -> vector<128x128xf32>
      %19 = arith.truncf %18 : vector<128x128xf32> to vector<128x128xbf16>
      %c0_11 = arith.constant 0 : index
      %c0_12 = arith.constant 0 : index
      %20 = vector.load %arg9[%c0_11, %c0_12] : memref<128x128xbf16, #tpu.memory_space<vmem>>, vector<128x128xbf16>
      tpu.vector_store %arg9[%c0_11, %c0_12], %19 {strides = array<i32>} : memref<128x128xbf16, #tpu.memory_space<vmem>>, vector<128x128xbf16>,
    } else {
    }
    %c1_i32 = arith.constant 1 : i32
    %5 = arith.cmpi eq, %arg0, %c1_i32 : i32
    %c0_i32_2 = arith.constant 0 : i32
    %6 = arith.cmpi eq, %arg1, %c0_i32_2 : i32
    %7 = arith.andi %5, %6 : i1
    %8 = arith.extui %7 : i1 to i32
    %c0_i32_3 = arith.constant 0 : i32
    %9 = arith.cmpi ne, %8, %c0_i32_3 : i32
    scf.if %9 {
      %c0 = arith.constant 0 : index
      %c0_8 = arith.constant 0 : index
      %16 = vector.load %arg11[%c0, %c0_8] : memref<128x128xbf16, #tpu.memory_space<vmem>>, vector<128x128xbf16>
      %c0_9 = arith.constant 0 : index
      %c0_10 = arith.constant 0 : index
      %17 = vector.load %arg6[%c0_9, %c0_10] : memref<128x128xbf16, #tpu.memory_space<vmem>>, vector<128x128xbf16>
      %cst = arith.constant dense<0.000000e+00> : vector<128x128xf32>
      %18 = tpu.matmul %16, %17, %cst {dimension_numbers = #tpu.dot_dimension_numbers<[1], [0], [0], [1], [0, 0, 1, 1], [], []>} : vector<128x128xbf16>, vector<128x128xbf16>, vector<128x128xf32> -> vector<128x128xf32>
      %19 = arith.truncf %18 : vector<128x128xf32> to vector<128x128xbf16>
      %c0_11 = arith.constant 0 : index
      %c0_12 = arith.constant 0 : index
      %20 = vector.load %arg10[%c0_11, %c0_12] : memref<128x128xbf16, #tpu.memory_space<vmem>>, vector<128x128xbf16>
      tpu.vector_store %arg10[%c0_11, %c0_12], %19 {strides = array<i32>} : memref<128x128xbf16, #tpu.memory_space<vmem>>, vector<128x128xbf16>,
    } else {
    }
    %c0_i32_4 = arith.constant 0 : i32
    %10 = arith.cmpi eq, %arg0, %c0_i32_4 : i32
    %11 = arith.extui %10 : i1 to i32
    %c0_i32_5 = arith.constant 0 : i32
    %12 = arith.cmpi ne, %11, %c0_i32_5 : i32
    scf.if %12 {
      %c0 = arith.constant 0 : index
      %c0_8 = arith.constant 0 : index
      %16 = vector.load %arg2[%c0, %c0_8] : memref<128x128xbf16, #tpu.memory_space<vmem>>, vector<128x128xbf16>
      %c0_9 = arith.constant 0 : index
      %c0_10 = arith.constant 0 : index
      %17 = vector.load %arg9[%c0_9, %c0_10] : memref<128x128xbf16, #tpu.memory_space<vmem>>, vector<128x128xbf16>
      %cst = arith.constant dense<0.000000e+00> : vector<128x128xf32>
      %18 = tpu.matmul %16, %17, %cst {dimension_numbers = #tpu.dot_dimension_numbers<[1], [0], [0], [1], [0, 0, 1, 1], [], []>} : vector<128x128xbf16>, vector<128x128xbf16>, vector<128x128xf32> -> vector<128x128xf32>
      %c0_11 = arith.constant 0 : index
      %c0_12 = arith.constant 0 : index
      %19 = vector.load %arg5[%c0_11, %c0_12] : memref<1x128xf32, #tpu.memory_space<vmem>>, vector<1x128xf32>
      %20 = vector.broadcast %19 : vector<1x128xf32> to vector<128x128xf32>
      %21 = arith.addf %18, %20 : vector<128x128xf32>
      %cst_13 = arith.constant 0.000000e+00 : f32
      %22 = vector.broadcast %cst_13 : f32 to vector<128x128xf32>
      %23 = arith.maximumf %21, %22 : vector<128x128xf32>
      %24 = tpu.iota {dimensions = array<i32: 0>} : vector<128x1xi32>
      %c128_i32 = arith.constant 128 : i32
      %25 = arith.muli %arg1, %c128_i32 : i32
      %26 = vector.broadcast %25 : i32 to vector<128x1xi32>
      %27 = arith.addi %24, %26 : vector<128x1xi32>
      %c8_i32 = arith.constant 8 : i32
      %28 = vector.broadcast %c8_i32 : i32 to vector<128x1xi32>
      %29 = arith.cmpi slt, %27, %28 : vector<128x1xi32>
      %cst_14 = arith.constant 0.000000e+00 : f32
      %30 = vector.shape_cast %29 : vector<128x1xi1> to vector<128x1xi1>
      %31 = vector.broadcast %30 : vector<128x1xi1> to vector<128x128xi1>
      %32 = vector.broadcast %cst_14 : f32 to vector<128x128xf32>
      %33 = arith.select %31, %23, %32 : vector<128x128xi1>, vector<128x128xf32>
      %c128_i32_15 = arith.constant 128 : i32
      %34 = arith.muli %arg1, %c128_i32_15 : i32
      %35 = tpu.assume_multiple %34, 128 : i32
      %36 = arith.truncf %33 : vector<128x128xf32> to vector<128x128xbf16>
      %37 = arith.index_cast %35 : i32 to index
      %c0_16 = arith.constant 0 : index
      %38 = vector.load %arg11[%37, %c0_16] : memref<128x128xbf16, #tpu.memory_space<vmem>>, vector<128x128xbf16>
      tpu.vector_store %arg11[%37, %c0_16], %36 {strides = array<i32>} : memref<128x128xbf16, #tpu.memory_space<vmem>>, vector<128x128xbf16>,
    } else {
    }
    %c1_i32_6 = arith.constant 1 : i32
    %13 = arith.cmpi eq, %arg0, %c1_i32_6 : i32
    %14 = arith.extui %13 : i1 to i32
    %c0_i32_7 = arith.constant 0 : i32
    %15 = arith.cmpi ne, %14, %c0_i32_7 : i32
    scf.if %15 {
      %c0 = arith.constant 0 : index
      %c0_8 = arith.constant 0 : index
      %16 = vector.load %arg2[%c0, %c0_8] : memref<128x128xbf16, #tpu.memory_space<vmem>>, vector<128x128xbf16>
      %c0_9 = arith.constant 0 : index
      %c0_10 = arith.constant 0 : index
      %17 = vector.load %arg10[%c0_9, %c0_10] : memref<128x128xbf16, #tpu.memory_space<vmem>>, vector<128x128xbf16>
      %cst = arith.constant dense<0.000000e+00> : vector<128x128xf32>
      %18 = tpu.matmul %16, %17, %cst {dimension_numbers = #tpu.dot_dimension_numbers<[1], [0], [0], [1], [0, 0, 1, 1], [], []>} : vector<128x128xbf16>, vector<128x128xbf16>, vector<128x128xf32> -> vector<128x128xf32>
      %c0_11 = arith.constant 0 : index
      %c0_12 = arith.constant 0 : index
      %19 = vector.load %arg7[%c0_11, %c0_12] : memref<1x128xf32, #tpu.memory_space<vmem>>, vector<1x128xf32>
      %20 = vector.broadcast %19 : vector<1x128xf32> to vector<128x128xf32>
      %21 = arith.addf %18, %20 : vector<128x128xf32>
      %c0_13 = arith.constant 0 : index
      %c0_14 = arith.constant 0 : index
      %22 = vector.load %arg8[%c0_13, %c0_14] : memref<128x128xf32, #tpu.memory_space<vmem>>, vector<128x128xf32>
      tpu.vector_store %arg8[%c0_13, %c0_14], %21 {strides = array<i32>} : memref<128x128xf32, #tpu.memory_space<vmem>>, vector<128x128xf32>,
    } else {
    }
    return
  }
  func.func @transform_0(%arg0: i32, %arg1: i32) -> (i32, i32) {
    %c0_i32 = arith.constant 0 : i32
    %c0_i32_0 = arith.constant 0 : i32
    return %arg1, %c0_i32 : i32, i32
  }
  func.func @transform_1(%arg0: i32, %arg1: i32) -> (i32, i32) {
    %c0_i32 = arith.constant 0 : i32
    %c0_i32_0 = arith.constant 0 : i32
    %c0_i32_1 = arith.constant 0 : i32
    return %c0_i32, %c0_i32_0 : i32, i32
  }
  func.func @transform_2(%arg0: i32, %arg1: i32) -> (i32, i32) {
    %c0_i32 = arith.constant 0 : i32
    %c0_i32_0 = arith.constant 0 : i32
    %c0_i32_1 = arith.constant 0 : i32
    return %c0_i32, %c0_i32_0 : i32, i32
  }
  func.func @transform_3(%arg0: i32, %arg1: i32) -> (i32, i32) {
    %c0_i32 = arith.constant 0 : i32
    %c0_i32_0 = arith.constant 0 : i32
    %c0_i32_1 = arith.constant 0 : i32
    return %c0_i32, %c0_i32_0 : i32, i32
  }
  func.func @transform_4(%arg0: i32, %arg1: i32) -> (i32, i32) {
    %c0_i32 = arith.constant 0 : i32
    %c0_i32_0 = arith.constant 0 : i32
    %c0_i32_1 = arith.constant 0 : i32
    return %c0_i32, %c0_i32_0 : i32, i32
  }
  func.func @transform_5(%arg0: i32, %arg1: i32) -> (i32, i32) {
    %c0_i32 = arith.constant 0 : i32
    %c0_i32_0 = arith.constant 0 : i32
    %c0_i32_1 = arith.constant 0 : i32
    return %c0_i32, %c0_i32_0 : i32, i32
  }
  func.func @transform_6(%arg0: i32, %arg1: i32) -> (i32, i32) {
    %0 = arith.muli %arg1, %arg0 : i32
    %c0_i32 = arith.constant 0 : i32
    %c0_i32_0 = arith.constant 0 : i32
    return %0, %c0_i32 : i32, i32
  }
}

</mosaic_0001>

<bundles_post_ra>
// kernel: _unnamed_function_.1
= control target key start
LH: loop header
LB: loop body
LE: loop exit
PB: predicated region body
PF: predicated region fallthrough
CT: control target
= control target key end

     0   :  { %s1732_s21 = smov 0   ;;  %s1734_s22 = smov 0   ;;  %s1939_s0 = inlined_call_operand.vmem [shape: bf16[128,128], index: 0, kind: input, shape index: {}]   ;;  %s1940_s1 = inlined_call_operand.vmem [shape: bf16[128,128], index: 1, kind: input, shape index: {}]   ;;  %s1941_s2 = inlined_call_operand.vmem [shape: bf16[128,128], index: 2, kind: input, shape index: {}]   ;;  %s1942_s3 = inlined_call_operand.vmem [shape: f32[1,128], index: 3, kind: input, shape index: {}]   ;;  %s1943_s4 = inlined_call_operand.vmem [shape: bf16[128,128], index: 4, kind: input, shape index: {}]   ;;  %s1944_s5 = inlined_call_operand.vmem [shape: f32[1,128], index: 5, kind: input, shape index: {}]   ;;  %s1945_s6 = inlined_call_operand.vmem [shape: f32[128,128], index: 6, kind: output, shape index: {}]  }
   0x1   :  { %s1736_s23 = smov 0  }
   0x2 LB: > { %s28_s24 = sadd.s32 1, %s1689_s22  ;;  %p1296_p0 = scmp.ge.s32.totalorder %s1693_s23, 1  ;;  %s1693_s23 = sphi %s1736_s23, %s16_s23   ;;  %s1689_s22 = sphi %s1734_s22, %s1947_s22   ;;  %s1685_s21 = sphi %s1732_s21, %s1946_s21  }
   0x3   : > { %p30_p1 = scmp.ge.s32.totalorder %s28_s24, 2  ;;  %p227_p2 = scmp.lt.s32.totalorder %s1693_s23, 3 }
   0x5   : > { %s1949_s24 = smov (%p30_p1, %s28_s24), 0  ;;  %p228_p3 = pnand %p1296_p0, %p227_p2 }
   0x6   : > { %p273_p4 = scmp.eq.s32.totalorder (!%p228_p3), %s1685_s21, 0 }
   0x7   : > { %231 = sbr.rel (%p228_p3) target bundleno = 1050 (0x41a), region = 44 }
   0xe   : > { %278 = sbr.rel (!%p273_p4) target bundleno = 273 (0x111), region = 48  ;;  %v1631_v0 = vld [vmem:[%s1941_s2] sm:$0xff] (%p273_p4)   ;;  %v1632_v1 = vld [vmem:[%s1941_s2 + $0x8] sm:$0xff] (%p273_p4)   ;;  %v1633_v2 = vld [vmem:[%s1941_s2 + $0x10] sm:$0xff] (%p273_p4)  }
   0xf   : > { %1413 = vmatprep.subr.bf16.mxu0 (%p273_p4), %v1631_v0  ;;  %1541 = vmatprep.subr.bf16.mxu1 (%p273_p4), %v1631_v0  ;;  %v1634_v3 = vld [vmem:[%s1941_s2 + $0x18] sm:$0xff] (%p273_p4)   ;;  %v1639_v4 = vld [vmem:[%s1940_s1] sm:$0xff] (%p273_p4)   ;;  %v1636_v7 = vld [vmem:[%s1941_s2 + $0x28] sm:$0xff] (%p273_p4)  }
  0x10   : > { %1414 = vmatpush3.bf16.msra.mxu0 (%p273_p4), %v1631_v0  ;;  %1549 = vmatpush3.bf16.msra.mxu1 (%p273_p4), %v1631_v0  ;;  %v1640_v5 = vld [vmem:[%s1940_s1 + $0x20] sm:$0xff] (%p273_p4)   ;;  %v1637_v8 = vld [vmem:[%s1941_s2 + $0x30] sm:$0xff] (%p273_p4)   ;;  %v1638_v9 = vld [vmem:[%s1941_s2 + $0x38] sm:$0xff] (%p273_p4)  }
  0x11   : > { %1415 = vmatprep.subr.bf16.mxu0 (%p273_p4), %v1632_v1  ;;  %1542 = vmatprep.subr.bf16.mxu1 (%p273_p4), %v1632_v1  ;;  %v1635_v6 = vld [vmem:[%s1941_s2 + $0x20] sm:$0xff] (%p273_p4)   ;;  %v1641_v10 = vld [vmem:[%s1940_s1 + $0x8] sm:$0xff] (%p273_p4)   ;;  %v1643_v12 = vld [vmem:[%s1940_s1 + $0x10] sm:$0xff] (%p273_p4)  }
  0x12   : > { %1429 = vmatprep.mubr.bf16.mxu0 (%p273_p4), %v1639_v4  ;;  %1437 = vmatprep.mubr.bf16.mxu1 (%p273_p4), %v1640_v5  ;;  %v1642_v11 = vld [vmem:[%s1940_s1 + $0x28] sm:$0xff] (%p273_p4)   ;;  %v1644_v13 = vld [vmem:[%s1940_s1 + $0x30] sm:$0xff] (%p273_p4)   ;;  %v1645_v14 = vld [vmem:[%s1940_s1 + $0x18] sm:$0xff] (%p273_p4)  }
  0x13   : > { %v1646_v15 = vld [vmem:[%s1940_s1 + $0x38] sm:$0xff] (%p273_p4)  }
  0x14   : > { %1416 = vmatpush3.bf16.msra.mxu0 (%p273_p4), %v1632_v1  ;;  %1550 = vmatpush3.bf16.msra.mxu1 (%p273_p4), %v1632_v1 }
  0x15   : > { %1417 = vmatprep.subr.bf16.mxu0 %v1633_v2  ;;  %1543 = vmatprep.subr.bf16.mxu1 %v1633_v2 }
  0x18   : > { %1418 = vmatpush3.bf16.msra.mxu0 %v1633_v2  ;;  %1551 = vmatpush3.bf16.msra.mxu1 %v1633_v2 }
  0x19   : > { %1419 = vmatprep.subr.bf16.mxu0 %v1634_v3  ;;  %1544 = vmatprep.subr.bf16.mxu1 %v1634_v3 }
  0x1c   : > { %1420 = vmatpush3.bf16.msra.mxu0 %v1634_v3  ;;  %1552 = vmatpush3.bf16.msra.mxu1 %v1634_v3 }
  0x1d   : > { %1421 = vmatprep.subr.bf16.mxu0 %v1635_v6  ;;  %1545 = vmatprep.subr.bf16.mxu1 %v1635_v6 }
  0x20   : > { %1422 = vmatpush3.bf16.msra.mxu0 %v1635_v6  ;;  %1553 = vmatpush3.bf16.msra.mxu1 %v1635_v6 }
  0x21   : > { %1423 = vmatprep.subr.bf16.mxu0 %v1636_v7  ;;  %1546 = vmatprep.subr.bf16.mxu1 %v1636_v7 }
  0x24   : > { %1424 = vmatpush3.bf16.msra.mxu0 %v1636_v7  ;;  %1554 = vmatpush3.bf16.msra.mxu1 %v1636_v7 }
  0x25   : > { %1425 = vmatprep.subr.bf16.mxu0 %v1637_v8  ;;  %1547 = vmatprep.subr.bf16.mxu1 %v1637_v8 }
  0x28   : > { %1426 = vmatpush3.bf16.msra.mxu0 %v1637_v8  ;;  %1555 = vmatpush3.bf16.msra.mxu1 %v1637_v8 }
  0x29   : > { %1427 = vmatprep.subr.bf16.mxu0 %v1638_v9  ;;  %1548 = vmatprep.subr.bf16.mxu1 %v1638_v9 }
  0x2c   : > { %1428 = vmatpush3.bf16.msra.mxu0 %v1638_v9  ;;  %1556 = vmatpush3.bf16.msra.mxu1 %v1638_v9 }
  0x2f   : > { %1430 = vmatmul.mubr.bf16.vlgmr.msra.gmra.mrb[0].mxu0 %v1641_v10  ;;  %1438 = vmatmul.mubr.bf16.vlgmr.msra.gmra.mrb[0].mxu1 %v1642_v11 }
  0x30   : > { %1433 = vmatprep.mubr.bf16.mxu0 %v1643_v12  ;;  %1441 = vmatprep.mubr.bf16.mxu1 %v1644_v13 }
  0x37   : > { %1434 = vmatmul.mubr.bf16.gmra.mrb[4].mxu0 %v1645_v14  ;;  %1442 = vmatmul.mubr.bf16.gmra.mrb[4].mxu1 %v1646_v15 }
 0x102   : > { %v1431_v16 = vpop.f32.mrb[0].mxu0  ;;  %v1439_v17 = vpop.f32.mrb[0].mxu1 }
 0x103   : > { %v441_v18 = vpop.f32.mrb[1].mxu0  ;;  %v473_v19 = vpop.f32.mrb[1].mxu1 }
 0x104   : > { %v1432_v20 = vpop.f32.mrb[2].mxu0  ;;  %v1440_v21 = vpop.f32.mrb[2].mxu1 }
 0x105   : > { %v505_v22 = vpack.c.bf16 %v1432_v20, %v1431_v16  ;;  %v509_v23 = vpack.c.bf16 %v1440_v21, %v1439_v17  ;;  %v444_v24 = vpop.f32.mrb[3].mxu0  ;;  %v476_v25 = vpop.f32.mrb[3].mxu1 }
 0x106   : > { %v504_v26 = vpack.c.bf16 %v444_v24, %v441_v18  ;;  %v508_v27 = vpack.c.bf16 %v476_v25, %v473_v19 }
 0x107   : > { %513 = vst [vmem:[#allocation2 + $0x8] sm:$0xff] %v505_v22  ;;  %517 = vst [vmem:[#allocation2 + $0x28] sm:$0xff] %v509_v23 }
 0x108   : > { %512 = vst [vmem:[#allocation2] sm:$0xff] %v504_v26  ;;  %516 = vst [vmem:[#allocation2 + $0x20] sm:$0xff] %v508_v27 }
 0x10a   : > { %v1435_v28 = vpop.f32.mrb[4].mxu0  ;;  %v1443_v29 = vpop.f32.mrb[4].mxu1 }
 0x10b   : > { %v457_v30 = vpop.f32.mrb[5].mxu0  ;;  %v489_v31 = vpop.f32.mrb[5].mxu1 }
 0x10c   : > { %v1436_v32 = vpop.f32.mrb[6].mxu0  ;;  %v1444_v33 = vpop.f32.mrb[6].mxu1 }
 0x10d   : > { %v507_v34 = vpack.c.bf16 %v1436_v32, %v1435_v28  ;;  %v511_v35 = vpack.c.bf16 %v1444_v33, %v1443_v29  ;;  %v460_v36 = vpop.f32.mrb[7].mxu0  ;;  %v492_v37 = vpop.f32.mrb[7].mxu1 }
 0x10e   : > { %v506_v38 = vpack.c.bf16 %v460_v36, %v457_v30  ;;  %v510_v39 = vpack.c.bf16 %v492_v37, %v489_v31 }
 0x10f   : > { %515 = vst [vmem:[#allocation2 + $0x18] sm:$0xff] %v507_v34  ;;  %519 = vst [vmem:[#allocation2 + $0x38] sm:$0xff] %v511_v35 }
 0x110   : > { %514 = vst [vmem:[#allocation2 + $0x10] sm:$0xff] %v506_v38  ;;  %518 = vst [vmem:[#allocation2 + $0x30] sm:$0xff] %v510_v39 }
 0x111 PF: > { %p520_p5 = scmp.eq.s32.totalorder %s1685_s21, 1 }
 0x112   : > { %v1647_v40 = vld [vmem:[%s1943_s4] sm:$0xff] (%p520_p5)   ;;  %v1648_v41 = vld [vmem:[%s1943_s4 + $0x8] sm:$0xff] (%p520_p5)   ;;  %v1649_v42 = vld [vmem:[%s1943_s4 + $0x10] sm:$0xff] (%p520_p5)  }
 0x113   : > { %524 = sbr.rel (!%p520_p5) target bundleno = 533 (0x215), region = 52  ;;  %1445 = vmatprep.subr.bf16.mxu0 (%p520_p5), %v1647_v40  ;;  %1557 = vmatprep.subr.bf16.mxu1 (%p520_p5), %v1647_v40  ;;  %v1650_v43 = vld [vmem:[%s1943_s4 + $0x18] sm:$0xff] (%p520_p5)   ;;  %v525_v44 = vld [vmem:[#allocation4] sm:$0xff] (%p520_p5)  ;;  %v1652_v47 = vld [vmem:[%s1943_s4 + $0x28] sm:$0xff] (%p520_p5)  }
 0x114   : > { %1446 = vmatpush3.bf16.msra.mxu0 (%p520_p5), %v1647_v40  ;;  %1565 = vmatpush3.bf16.msra.mxu1 (%p520_p5), %v1647_v40  ;;  %v529_v45 = vld [vmem:[#allocation4 + $0x20] sm:$0xff] (%p520_p5)  ;;  %v1653_v48 = vld [vmem:[%s1943_s4 + $0x30] sm:$0xff] (%p520_p5)   ;;  %v1654_v49 = vld [vmem:[%s1943_s4 + $0x38] sm:$0xff] (%p520_p5)  }
 0x115   : > { %1447 = vmatprep.subr.bf16.mxu0 (%p520_p5), %v1648_v41  ;;  %1558 = vmatprep.subr.bf16.mxu1 (%p520_p5), %v1648_v41  ;;  %v1651_v46 = vld [vmem:[%s1943_s4 + $0x20] sm:$0xff] (%p520_p5)   ;;  %v526_v50 = vld [vmem:[#allocation4 + $0x8] sm:$0xff] (%p520_p5)  ;;  %v527_v52 = vld [vmem:[#allocation4 + $0x10] sm:$0xff] (%p520_p5) }
 0x116   : > { %1461 = vmatprep.mubr.bf16.mxu0 (%p520_p5), %v525_v44  ;;  %1469 = vmatprep.mubr.bf16.mxu1 (%p520_p5), %v529_v45  ;;  %v530_v51 = vld [vmem:[#allocation4 + $0x28] sm:$0xff] (%p520_p5)  ;;  %v531_v53 = vld [vmem:[#allocation4 + $0x30] sm:$0xff] (%p520_p5)  ;;  %v528_v54 = vld [vmem:[#allocation4 + $0x18] sm:$0xff] (%p520_p5) }
 0x117   : > { %v532_v55 = vld [vmem:[#allocation4 + $0x38] sm:$0xff] (%p520_p5) }
 0x118   : > { %1448 = vmatpush3.bf16.msra.mxu0 (%p520_p5), %v1648_v41  ;;  %1566 = vmatpush3.bf16.msra.mxu1 (%p520_p5), %v1648_v41 }
 0x119   : > { %1449 = vmatprep.subr.bf16.mxu0 (%p520_p5), %v1649_v42  ;;  %1559 = vmatprep.subr.bf16.mxu1 (%p520_p5), %v1649_v42 }
 0x11c   : > { %1450 = vmatpush3.bf16.msra.mxu0 %v1649_v42  ;;  %1567 = vmatpush3.bf16.msra.mxu1 %v1649_v42 }
 0x11d   : > { %1451 = vmatprep.subr.bf16.mxu0 %v1650_v43  ;;  %1560 = vmatprep.subr.bf16.mxu1 %v1650_v43 }
 0x120   : > { %1452 = vmatpush3.bf16.msra.mxu0 %v1650_v43  ;;  %1568 = vmatpush3.bf16.msra.mxu1 %v1650_v43 }
 0x121   : > { %1453 = vmatprep.subr.bf16.mxu0 %v1651_v46  ;;  %1561 = vmatprep.subr.bf16.mxu1 %v1651_v46 }
 0x124   : > { %1454 = vmatpush3.bf16.msra.mxu0 %v1651_v46  ;;  %1569 = vmatpush3.bf16.msra.mxu1 %v1651_v46 }
 0x125   : > { %1455 = vmatprep.subr.bf16.mxu0 %v1652_v47  ;;  %1562 = vmatprep.subr.bf16.mxu1 %v1652_v47 }
 0x128   : > { %1456 = vmatpush3.bf16.msra.mxu0 %v1652_v47  ;;  %1570 = vmatpush3.bf16.msra.mxu1 %v1652_v47 }
 0x129   : > { %1457 = vmatprep.subr.bf16.mxu0 %v1653_v48  ;;  %1563 = vmatprep.subr.bf16.mxu1 %v1653_v48 }
 0x12c   : > { %1458 = vmatpush3.bf16.msra.mxu0 %v1653_v48  ;;  %1571 = vmatpush3.bf16.msra.mxu1 %v1653_v48 }
 0x12d   : > { %1459 = vmatprep.subr.bf16.mxu0 %v1654_v49  ;;  %1564 = vmatprep.subr.bf16.mxu1 %v1654_v49 }
 0x130   : > { %1460 = vmatpush3.bf16.msra.mxu0 %v1654_v49  ;;  %1572 = vmatpush3.bf16.msra.mxu1 %v1654_v49 }
 0x133   : > { %1462 = vmatmul.mubr.bf16.vlgmr.msra.gmra.mrb[0].mxu0 %v526_v50  ;;  %1470 = vmatmul.mubr.bf16.vlgmr.msra.gmra.mrb[0].mxu1 %v530_v51 }
 0x134   : > { %1465 = vmatprep.mubr.bf16.mxu0 %v527_v52  ;;  %1473 = vmatprep.mubr.bf16.mxu1 %v531_v53 }
 0x13b   : > { %1466 = vmatmul.mubr.bf16.gmra.mrb[4].mxu0 %v528_v54  ;;  %1474 = vmatmul.mubr.bf16.gmra.mrb[4].mxu1 %v532_v55 }
 0x206   : > { %v1463_v56 = vpop.f32.mrb[0].mxu0  ;;  %v1471_v57 = vpop.f32.mrb[0].mxu1 }
 0x207   : > { %v631_v58 = vpop.f32.mrb[1].mxu0  ;;  %v663_v59 = vpop.f32.mrb[1].mxu1 }
 0x208   : > { %v1464_v60 = vpop.f32.mrb[2].mxu0  ;;  %v1472_v61 = vpop.f32.mrb[2].mxu1 }
 0x209   : > { %v695_v62 = vpack.c.bf16 %v1464_v60, %v1463_v56  ;;  %v699_v63 = vpack.c.bf16 %v1472_v61, %v1471_v57  ;;  %v634_v0 = vpop.f32.mrb[3].mxu0  ;;  %v666_v1 = vpop.f32.mrb[3].mxu1 }
 0x20a   : > { %v694_v2 = vpack.c.bf16 %v634_v0, %v631_v58  ;;  %v698_v3 = vpack.c.bf16 %v666_v1, %v663_v59 }
 0x20b   : > { %703 = vst [vmem:[#allocation3 + $0x8] sm:$0xff] %v695_v62  ;;  %707 = vst [vmem:[#allocation3 + $0x28] sm:$0xff] %v699_v63 }
 0x20c   : > { %702 = vst [vmem:[#allocation3] sm:$0xff] %v694_v2  ;;  %706 = vst [vmem:[#allocation3 + $0x20] sm:$0xff] %v698_v3 }
 0x20e   : > { %v1467_v4 = vpop.f32.mrb[4].mxu0  ;;  %v1475_v5 = vpop.f32.mrb[4].mxu1 }
 0x20f   : > { %v647_v6 = vpop.f32.mrb[5].mxu0  ;;  %v679_v7 = vpop.f32.mrb[5].mxu1 }
 0x210   : > { %v1468_v8 = vpop.f32.mrb[6].mxu0  ;;  %v1476_v9 = vpop.f32.mrb[6].mxu1 }
 0x211   : > { %v697_v10 = vpack.c.bf16 %v1468_v8, %v1467_v4  ;;  %v701_v11 = vpack.c.bf16 %v1476_v9, %v1475_v5  ;;  %v650_v12 = vpop.f32.mrb[7].mxu0  ;;  %v682_v13 = vpop.f32.mrb[7].mxu1 }
 0x212   : > { %v696_v14 = vpack.c.bf16 %v650_v12, %v647_v6  ;;  %v700_v15 = vpack.c.bf16 %v682_v13, %v679_v7 }
 0x213   : > { %705 = vst [vmem:[#allocation3 + $0x18] sm:$0xff] %v697_v10  ;;  %709 = vst [vmem:[#allocation3 + $0x38] sm:$0xff] %v701_v11 }
 0x214   : > { %704 = vst [vmem:[#allocation3 + $0x10] sm:$0xff] %v696_v14  ;;  %708 = vst [vmem:[#allocation3 + $0x30] sm:$0xff] %v700_v15 }
 0x215 PF: > { %p1323_p6 = scmp.ne.s32.totalorder %s1685_s21, 0 }
 0x216   : > { %v729_v16 = vld [vmem:[#allocation2] sm:$0xff] (!%p1323_p6)  ;;  %v730_v17 = vld [vmem:[#allocation2 + $0x8] sm:$0xff] (!%p1323_p6)  ;;  %v731_v18 = vld [vmem:[#allocation2 + $0x10] sm:$0xff] (!%p1323_p6)  ;;  %v1695_v32 = vmov (!%p1323_p6), 0.0|0.0   ;;  %v1696_v44 = vmov (!%p1323_p6), 0.0  }
 0x217   : > { %712 = sbr.rel (%p1323_p6) target bundleno = 790 (0x316), region = 56  ;;  %1477 = vmatprep.subr.bf16.mxu0 (!%p1323_p6), %v729_v16  ;;  %1573 = vmatprep.subr.bf16.mxu1 (!%p1323_p6), %v729_v16  ;;  %v1655_v19 = vld [vmem:[%s1939_s0] sm:$0xff] (!%p1323_p6)   ;;  %v732_v21 = vld [vmem:[#allocation2 + $0x18] sm:$0xff] (!%p1323_p6)  ;;  %v734_v23 = vld [vmem:[#allocation2 + $0x28] sm:$0xff] (!%p1323_p6)  ;;  %1017 = vst [vmem:[#allocation4 + $0x8] sm:$0xff] (!%p1323_p6), %v1695_v32 }
 0x218   : > { %1478 = vmatpush3.bf16.msra.mxu0 (!%p1323_p6), %v729_v16  ;;  %1581 = vmatpush3.bf16.msra.mxu1 (!%p1323_p6), %v729_v16  ;;  %v1656_v20 = vld [vmem:[%s1939_s0 + $0x20] sm:$0xff] (!%p1323_p6)   ;;  %v735_v24 = vld [vmem:[#allocation2 + $0x30] sm:$0xff] (!%p1323_p6)  ;;  %v736_v25 = vld [vmem:[#allocation2 + $0x38] sm:$0xff] (!%p1323_p6)  ;;  %1018 = vst [vmem:[#allocation4 + $0x10] sm:$0xff] (!%p1323_p6), %v1695_v32 }
 0x219   : > { %1479 = vmatprep.subr.bf16.mxu0 (!%p1323_p6), %v730_v17  ;;  %1574 = vmatprep.subr.bf16.mxu1 (!%p1323_p6), %v730_v17  ;;  %v733_v22 = vld [vmem:[#allocation2 + $0x20] sm:$0xff] (!%p1323_p6)  ;;  %v1657_v26 = vld [vmem:[%s1939_s0 + $0x8] sm:$0xff] (!%p1323_p6)   ;;  %v1659_v28 = vld [vmem:[%s1939_s0 + $0x10] sm:$0xff] (!%p1323_p6)   ;;  %1019 = vst [vmem:[#allocation4 + $0x18] sm:$0xff] (!%p1323_p6), %v1695_v32 }
 0x21a   : > { %1493 = vmatprep.mubr.bf16.mxu0 (!%p1323_p6), %v1655_v19  ;;  %1501 = vmatprep.mubr.bf16.mxu1 (!%p1323_p6), %v1656_v20  ;;  %v1658_v27 = vld [vmem:[%s1939_s0 + $0x28] sm:$0xff] (!%p1323_p6)   ;;  %v1660_v29 = vld [vmem:[%s1939_s0 + $0x30] sm:$0xff] (!%p1323_p6)   ;;  %v1661_v30 = vld [vmem:[%s1939_s0 + $0x18] sm:$0xff] (!%p1323_p6)   ;;  %1020 = vst [vmem:[#allocation4 + $0x20] sm:$0xff] (!%p1323_p6), %v1695_v32 }
 0x21b   : > { %v1662_v31 = vld [vmem:[%s1939_s0 + $0x38] sm:$0xff] (!%p1323_p6)   ;;  %1021 = vst [vmem:[#allocation4 + $0x28] sm:$0xff] (!%p1323_p6), %v1695_v32  ;;  %1022 = vst [vmem:[#allocation4 + $0x30] sm:$0xff] (!%p1323_p6), %v1695_v32  ;;  %v1324_v33 = vld [vmem:[%s1942_s3] ss:$0 sm:$0xff] (!%p1323_p6) }
 0x21c   : > { %1480 = vmatpush3.bf16.msra.mxu0 (!%p1323_p6), %v730_v17  ;;  %1582 = vmatpush3.bf16.msra.mxu1 (!%p1323_p6), %v730_v17  ;;  %1023 = vst [vmem:[#allocation4 + $0x38] sm:$0xff] (!%p1323_p6), %v1695_v32 }
 0x21d   : > { %1481 = vmatprep.subr.bf16.mxu0 (!%p1323_p6), %v731_v18  ;;  %1575 = vmatprep.subr.bf16.mxu1 (!%p1323_p6), %v731_v18 }
 0x220   : > { %1482 = vmatpush3.bf16.msra.mxu0 %v731_v18  ;;  %1583 = vmatpush3.bf16.msra.mxu1 %v731_v18 }
 0x221   : > { %1483 = vmatprep.subr.bf16.mxu0 %v732_v21  ;;  %1576 = vmatprep.subr.bf16.mxu1 %v732_v21 }
 0x224   : > { %1484 = vmatpush3.bf16.msra.mxu0 %v732_v21  ;;  %1584 = vmatpush3.bf16.msra.mxu1 %v732_v21 }
 0x225   : > { %1485 = vmatprep.subr.bf16.mxu0 %v733_v22  ;;  %1577 = vmatprep.subr.bf16.mxu1 %v733_v22 }
 0x228   : > { %1486 = vmatpush3.bf16.msra.mxu0 %v733_v22  ;;  %1585 = vmatpush3.bf16.msra.mxu1 %v733_v22 }
 0x229   : > { %1487 = vmatprep.subr.bf16.mxu0 %v734_v23  ;;  %1578 = vmatprep.subr.bf16.mxu1 %v734_v23 }
 0x22c   : > { %1488 = vmatpush3.bf16.msra.mxu0 %v734_v23  ;;  %1586 = vmatpush3.bf16.msra.mxu1 %v734_v23 }
 0x22d   : > { %1489 = vmatprep.subr.bf16.mxu0 %v735_v24  ;;  %1579 = vmatprep.subr.bf16.mxu1 %v735_v24 }
 0x230   : > { %1490 = vmatpush3.bf16.msra.mxu0 %v735_v24  ;;  %1587 = vmatpush3.bf16.msra.mxu1 %v735_v24 }
 0x231   : > { %1491 = vmatprep.subr.bf16.mxu0 %v736_v25  ;;  %1580 = vmatprep.subr.bf16.mxu1 %v736_v25 }
 0x234   : > { %1492 = vmatpush3.bf16.msra.mxu0 %v736_v25  ;;  %1588 = vmatpush3.bf16.msra.mxu1 %v736_v25 }
 0x237   : > { %1494 = vmatmul.mubr.bf16.vlgmr.msra.gmra.mrb[0].mxu0 %v1657_v26  ;;  %1502 = vmatmul.mubr.bf16.vlgmr.msra.gmra.mrb[0].mxu1 %v1658_v27 }
 0x238   : > { %1497 = vmatprep.mubr.bf16.mxu0 %v1659_v28  ;;  %1505 = vmatprep.mubr.bf16.mxu1 %v1660_v29 }
 0x23f   : > { %1498 = vmatmul.mubr.bf16.gmra.mrb[4].mxu0 %v1661_v30  ;;  %1506 = vmatmul.mubr.bf16.gmra.mrb[4].mxu1 %v1662_v31 }
 0x30a   : > { %v1495_v34 = vpop.f32.mrb[0].mxu0  ;;  %v1503_v35 = vpop.f32.mrb[0].mxu1 }
 0x30b   : > { %v826_v36 = vpop.f32.mrb[1].mxu0  ;;  %v858_v37 = vpop.f32.mrb[1].mxu1 }
 0x30c   : > { %v827_v38 = vadd.f32 %v1324_v33, %v826_v36  ;;  %v1496_v39 = vpop.f32.mrb[2].mxu0  ;;  %v1504_v40 = vpop.f32.mrb[2].mxu1 }
 0x30d   : > { %v829_v41 = vpop.f32.mrb[3].mxu0  ;;  %v861_v42 = vpop.f32.mrb[3].mxu1 }
 0x30e   : > { %v889_v43 = vmax.f32 %v827_v38, 0.0 }
 0x310   : > { %v1004_v45 = vpack.c.bf16 %v1696_v44, %v889_v43 }
 0x312   : > { %1016 = vst [vmem:[#allocation4] sm:$0xff] %v1004_v45  ;;  %v1499_v46 = vpop.f32.mrb[4].mxu0  ;;  %v1507_v47 = vpop.f32.mrb[4].mxu1 }
 0x313   : > { %v842_v48 = vpop.f32.mrb[5].mxu0  ;;  %v874_v49 = vpop.f32.mrb[5].mxu1 }
 0x314   : > { %v1500_v50 = vpop.f32.mrb[6].mxu0  ;;  %v1508_v51 = vpop.f32.mrb[6].mxu1 }
 0x315   : > { %v845_v52 = vpop.f32.mrb[7].mxu0  ;;  %v877_v53 = vpop.f32.mrb[7].mxu1 }
 0x316 PF: > { %p1333_p7 = scmp.ne.s32.totalorder %s1685_s21, 1 }
 0x317   : > { %v1043_v54 = vld [vmem:[#allocation3] sm:$0xff] (!%p1333_p7)  ;;  %v1044_v55 = vld [vmem:[#allocation3 + $0x8] sm:$0xff] (!%p1333_p7)  ;;  %v1045_v56 = vld [vmem:[#allocation3 + $0x10] sm:$0xff] (!%p1333_p7) }
 0x318   : > { %1026 = sbr.rel (%p1333_p7) target bundleno = 1050 (0x41a), region = 60  ;;  %1509 = vmatprep.subr.bf16.mxu0 (!%p1333_p7), %v1043_v54  ;;  %1589 = vmatprep.subr.bf16.mxu1 (!%p1333_p7), %v1043_v54  ;;  %v1663_v57 = vld [vmem:[%s1939_s0] sm:$0xff] (!%p1333_p7)   ;;  %v1046_v59 = vld [vmem:[#allocation3 + $0x18] sm:$0xff] (!%p1333_p7)  ;;  %v1048_v61 = vld [vmem:[#allocation3 + $0x28] sm:$0xff] (!%p1333_p7) }
 0x319   : > { %1510 = vmatpush3.bf16.msra.mxu0 (!%p1333_p7), %v1043_v54  ;;  %1597 = vmatpush3.bf16.msra.mxu1 (!%p1333_p7), %v1043_v54  ;;  %v1664_v58 = vld [vmem:[%s1939_s0 + $0x20] sm:$0xff] (!%p1333_p7)   ;;  %v1049_v62 = vld [vmem:[#allocation3 + $0x30] sm:$0xff] (!%p1333_p7)  ;;  %v1050_v63 = vld [vmem:[#allocation3 + $0x38] sm:$0xff] (!%p1333_p7) }
 0x31a   : > { %1511 = vmatprep.subr.bf16.mxu0 (!%p1333_p7), %v1044_v55  ;;  %1590 = vmatprep.subr.bf16.mxu1 (!%p1333_p7), %v1044_v55  ;;  %v1047_v60 = vld [vmem:[#allocation3 + $0x20] sm:$0xff] (!%p1333_p7)  ;;  %v1665_v0 = vld [vmem:[%s1939_s0 + $0x8] sm:$0xff] (!%p1333_p7)   ;;  %v1667_v2 = vld [vmem:[%s1939_s0 + $0x10] sm:$0xff] (!%p1333_p7)  }
 0x31b   : > { %1525 = vmatprep.mubr.bf16.mxu0 (!%p1333_p7), %v1663_v57  ;;  %1533 = vmatprep.mubr.bf16.mxu1 (!%p1333_p7), %v1664_v58  ;;  %v1666_v1 = vld [vmem:[%s1939_s0 + $0x28] sm:$0xff] (!%p1333_p7)   ;;  %v1668_v3 = vld [vmem:[%s1939_s0 + $0x30] sm:$0xff] (!%p1333_p7)   ;;  %v1669_v4 = vld [vmem:[%s1939_s0 + $0x18] sm:$0xff] (!%p1333_p7)  }
 0x31c   : > { %v1670_v5 = vld [vmem:[%s1939_s0 + $0x38] sm:$0xff] (!%p1333_p7)   ;;  %v1334_v6 = vld [vmem:[%s1944_s5] ss:$0 sm:$0xff] (!%p1333_p7) }
 0x31d   : > { %1512 = vmatpush3.bf16.msra.mxu0 (!%p1333_p7), %v1044_v55  ;;  %1598 = vmatpush3.bf16.msra.mxu1 (!%p1333_p7), %v1044_v55 }
 0x31e   : > { %1513 = vmatprep.subr.bf16.mxu0 (!%p1333_p7), %v1045_v56  ;;  %1591 = vmatprep.subr.bf16.mxu1 (!%p1333_p7), %v1045_v56 }
 0x321   : > { %1514 = vmatpush3.bf16.msra.mxu0 %v1045_v56  ;;  %1599 = vmatpush3.bf16.msra.mxu1 %v1045_v56 }
 0x322   : > { %1515 = vmatprep.subr.bf16.mxu0 %v1046_v59  ;;  %1592 = vmatprep.subr.bf16.mxu1 %v1046_v59 }
 0x325   : > { %1516 = vmatpush3.bf16.msra.mxu0 %v1046_v59  ;;  %1600 = vmatpush3.bf16.msra.mxu1 %v1046_v59 }
 0x326   : > { %1517 = vmatprep.subr.bf16.mxu0 %v1047_v60  ;;  %1593 = vmatprep.subr.bf16.mxu1 %v1047_v60 }
 0x329   : > { %1518 = vmatpush3.bf16.msra.mxu0 %v1047_v60  ;;  %1601 = vmatpush3.bf16.msra.mxu1 %v1047_v60 }
 0x32a   : > { %1519 = vmatprep.subr.bf16.mxu0 %v1048_v61  ;;  %1594 = vmatprep.subr.bf16.mxu1 %v1048_v61 }
 0x32d   : > { %1520 = vmatpush3.bf16.msra.mxu0 %v1048_v61  ;;  %1602 = vmatpush3.bf16.msra.mxu1 %v1048_v61 }
 0x32e   : > { %1521 = vmatprep.subr.bf16.mxu0 %v1049_v62  ;;  %1595 = vmatprep.subr.bf16.mxu1 %v1049_v62 }
 0x331   : > { %1522 = vmatpush3.bf16.msra.mxu0 %v1049_v62  ;;  %1603 = vmatpush3.bf16.msra.mxu1 %v1049_v62 }
 0x332   : > { %1523 = vmatprep.subr.bf16.mxu0 %v1050_v63  ;;  %1596 = vmatprep.subr.bf16.mxu1 %v1050_v63 }
 0x335   : > { %1524 = vmatpush3.bf16.msra.mxu0 %v1050_v63  ;;  %1604 = vmatpush3.bf16.msra.mxu1 %v1050_v63 }
 0x338   : > { %1526 = vmatmul.mubr.bf16.vlgmr.msra.gmra.mrb[0].mxu0 %v1665_v0  ;;  %1534 = vmatmul.mubr.bf16.vlgmr.msra.gmra.mrb[0].mxu1 %v1666_v1 }
 0x339   : > { %1529 = vmatprep.mubr.bf16.mxu0 %v1667_v2  ;;  %1537 = vmatprep.mubr.bf16.mxu1 %v1668_v3 }
 0x340   : > { %1530 = vmatmul.mubr.bf16.gmra.mrb[4].mxu0 %v1669_v4  ;;  %1538 = vmatmul.mubr.bf16.gmra.mrb[4].mxu1 %v1670_v5 }
 0x40b   : > { %v1527_v7 = vpop.f32.mrb[0].mxu0  ;;  %v1535_v8 = vpop.f32.mrb[0].mxu1 }
 0x40c   : > { %v1149_v9 = vadd.f32 %v1527_v7, %v1334_v6  ;;  %v1181_v10 = vadd.f32 %v1535_v8, %v1334_v6  ;;  %v1140_v11 = vpop.f32.mrb[1].mxu0  ;;  %v1172_v12 = vpop.f32.mrb[1].mxu1 }
 0x40d   : > { %v1141_v13 = vadd.f32 %v1334_v6, %v1140_v11  ;;  %v1173_v14 = vadd.f32 %v1334_v6, %v1172_v12  ;;  %v1528_v15 = vpop.f32.mrb[2].mxu0  ;;  %v1536_v16 = vpop.f32.mrb[2].mxu1 }
 0x40e   : > { %1205 = vst [vmem:[%s1945_s6 + $0x10] sm:$0xff] %v1149_v9  ;;  %1213 = vst [vmem:[%s1945_s6 + $0x50] sm:$0xff] %v1181_v10  ;;  %v1152_v17 = vadd.f32 %v1528_v15, %v1334_v6  ;;  %v1184_v18 = vadd.f32 %v1536_v16, %v1334_v6  ;;  %v1143_v19 = vpop.f32.mrb[3].mxu0  ;;  %v1175_v20 = vpop.f32.mrb[3].mxu1 }
 0x40f   : > { %1203 = vst [vmem:[%s1945_s6] sm:$0xff] %v1141_v13  ;;  %1211 = vst [vmem:[%s1945_s6 + $0x40] sm:$0xff] %v1173_v14  ;;  %v1144_v21 = vadd.f32 %v1334_v6, %v1143_v19  ;;  %v1176_v22 = vadd.f32 %v1334_v6, %v1175_v20 }
 0x410   : > { %1206 = vst [vmem:[%s1945_s6 + $0x18] sm:$0xff] %v1152_v17  ;;  %1214 = vst [vmem:[%s1945_s6 + $0x58] sm:$0xff] %v1184_v18 }
 0x411   : > { %1204 = vst [vmem:[%s1945_s6 + $0x8] sm:$0xff] %v1144_v21  ;;  %1212 = vst [vmem:[%s1945_s6 + $0x48] sm:$0xff] %v1176_v22 }
 0x413   : > { %v1531_v23 = vpop.f32.mrb[4].mxu0  ;;  %v1539_v24 = vpop.f32.mrb[4].mxu1 }
 0x414   : > { %v1165_v25 = vadd.f32 %v1531_v23, %v1334_v6  ;;  %v1197_v26 = vadd.f32 %v1539_v24, %v1334_v6  ;;  %v1156_v27 = vpop.f32.mrb[5].mxu0  ;;  %v1188_v28 = vpop.f32.mrb[5].mxu1 }
 0x415   : > { %v1157_v29 = vadd.f32 %v1334_v6, %v1156_v27  ;;  %v1189_v30 = vadd.f32 %v1334_v6, %v1188_v28  ;;  %v1532_v31 = vpop.f32.mrb[6].mxu0  ;;  %v1540_v32 = vpop.f32.mrb[6].mxu1 }
 0x416   : > { %1209 = vst [vmem:[%s1945_s6 + $0x30] sm:$0xff] %v1165_v25  ;;  %1217 = vst [vmem:[%s1945_s6 + $0x70] sm:$0xff] %v1197_v26  ;;  %v1168_v33 = vadd.f32 %v1532_v31, %v1334_v6  ;;  %v1200_v34 = vadd.f32 %v1540_v32, %v1334_v6  ;;  %v1159_v35 = vpop.f32.mrb[7].mxu0  ;;  %v1191_v36 = vpop.f32.mrb[7].mxu1 }
 0x417   : > { %1207 = vst [vmem:[%s1945_s6 + $0x20] sm:$0xff] %v1157_v29  ;;  %1215 = vst [vmem:[%s1945_s6 + $0x60] sm:$0xff] %v1189_v30  ;;  %v1160_v37 = vadd.f32 %v1334_v6, %v1159_v35  ;;  %v1192_v38 = vadd.f32 %v1334_v6, %v1191_v36 }
 0x418   : > { %1210 = vst [vmem:[%s1945_s6 + $0x38] sm:$0xff] %v1168_v33  ;;  %1218 = vst [vmem:[%s1945_s6 + $0x78] sm:$0xff] %v1200_v34 }
 0x419   : > { %1208 = vst [vmem:[%s1945_s6 + $0x28] sm:$0xff] %v1160_v37  ;;  %1216 = vst [vmem:[%s1945_s6 + $0x68] sm:$0xff] %v1192_v38 }
 0x41a PF: > { %s16_s23 = sadd.s32 1, %s1693_s23   ;;  %s1946_s21 = smov %s1689_s22 }
 0x41b   : > { %p13_p8 = scmp.ge.s32.totalorder %s16_s23, 4   ;;  %s1947_s22 = smov %s1949_s24 }
 0x41d   :  { %15 = sbr.rel (!%p13_p8) target bundleno = 2 (0x2), region = 91 }

</bundles_post_ra>
